<compile_context>
chip_gen: v7x
topology: tpu7x:2x2x1
jax: 0.10.0
libtpu: 0.0.40
codegen_flags: <defaults>
</compile_context>

<pallas_src>
import jax
import jax.numpy as jnp
from jax.experimental import pallas as pl
from jax.experimental.pallas import tpu as pltpu

# ------------------------------------------------------------------
# Small hyper-parameters consistent with CNN.__init__ (scaled down)
# ------------------------------------------------------------------
VOCAB   = 200      # nn.Embedding(20000, ...) scaled down
EMB     = 32       # emb_dims
HIDDEN  = 32       # hidden
CLASSES = 6
B, T    = 2, 16    # batch, sequence length (T-4 >= 1 required by the two convs)


# ------------------------------------------------------------------
# Fused kernel: embedding + conv1+ReLU + conv2+ReLU + max-pool + MLP head
# ------------------------------------------------------------------
def _cnn_fused_kernel(tok_ref,                 # [T, B]  int32 (time-major tokens)
                      emb_ref,                 # [VOCAB, E]
                      w1_ref, b1_ref,          # [3E, H], [1, H]   conv1 (taps folded)
                      w2_ref, b2_ref,          # [3H, H], [1, H]   conv2 (taps folded)
                      w3_ref, b3_ref,          # [H, H],  [1, H]   linear1
                      w4_ref, b4_ref,          # [H, C],  [1, C]   linear2
                      o_ref):                  # [B, C]
    Tn, Bn = tok_ref.shape
    V, _ = emb_ref.shape

    emb_tbl = emb_ref[...]
    w1, b1 = w1_ref[...], b1_ref[...]
    w2, b2 = w2_ref[...], b2_ref[...]

    # token-id lanes: iota over the vocab axis, reused for every batch row.
    iota_v = jax.lax.broadcasted_iota(jnp.int32, (Tn, V), 1)

    pooled_rows = []
    for b in range(Bn):                        # trace-time unrolled (B is tiny)
        # ---- Embedding via one-hot matmul (stays on MXU, no gather) ----
        tok_col = tok_ref[:, b:b + 1]                               # [T, 1] int32
        onehot = (iota_v == tok_col).astype(jnp.float32)            # [T, V]
        x = jnp.dot(onehot, emb_tbl,
                    preferred_element_type=jnp.float32)             # [T, E]

        # ---- Conv1d(E->H, k=3, valid) + Dropout(id) + ReLU ----
        # fold the 3 taps: [T-2, 3E] @ [3E, H]
        x1 = jnp.concatenate([x[0:Tn - 2], x[1:Tn - 1], x[2:Tn]], axis=-1)
        h1 = jnp.maximum(
            jnp.dot(x1, w1, preferred_element_type=jnp.float32) + b1, 0.0)  # [T-2, H]

        # ---- Conv1d(H->H, k=3, valid) + Dropout(id) + ReLU ----
        L1 = Tn - 2
        x2 = jnp.concatenate([h1[0:L1 - 2], h1[1:L1 - 1], h1[2:L1]], axis=-1)
        h2 = jnp.maximum(
            jnp.dot(x2, w2, preferred_element_type=jnp.float32) + b2, 0.0)  # [T-4, H]

        # ---- AdaptiveMaxPool1d(1): max over time ----
        pooled_rows.append(jnp.max(h2, axis=0, keepdims=True))              # [1, H]

    pooled = jnp.concatenate(pooled_rows, axis=0)                           # [B, H]

    # ---- Classifier head: Dropout(id) -> Linear -> ReLU -> Dropout(id) -> Linear ----
    z = jnp.maximum(
        jnp.dot(pooled, w3_ref[...], preferred_element_type=jnp.float32)
        + b3_ref[...], 0.0)                                                 # [B, H]
    o_ref[...] = (jnp.dot(z, w4_ref[...], preferred_element_type=jnp.float32)
                  + b4_ref[...])                                            # [B, C]


def cnn_forward(params, tokens, lengths=None):
    del lengths  # reference CNN.forward ignores `lengths` when x is a tensor
    tok_tm = tokens.astype(jnp.int32).T        # [T, B]: token ids onto sublanes
    vmem = pl.BlockSpec(memory_space=pltpu.MemorySpace.VMEM)
    return pl.pallas_call(
        _cnn_fused_kernel,
        out_shape=jax.ShapeDtypeStruct((tokens.shape[0], CLASSES), jnp.float32),
        in_specs=[vmem] * 10,                  # whole arrays resident in VMEM
        out_specs=vmem,
    )(tok_tm, params['emb'],
      params['conv1_w'], params['conv1_b'],
      params['conv2_w'], params['conv2_b'],
      params['lin1_w'], params['lin1_b'],
      params['lin2_w'], params['lin2_b'])


forward = jax.jit(cnn_forward)


# ------------------------------------------------------------------
# Deterministic synthetic parameters (pre-laid-out for the kernel)
# ------------------------------------------------------------------
def init_params(key):
    ks = iter(jax.random.split(key, 16))

    def nrm(shape, scale=0.1):
        return jax.random.normal(next(ks), shape, jnp.float32) * scale

    p = {}
    p['emb'] = nrm((VOCAB, EMB), 0.5)
    # Conv1d weights with taps folded: row k*C_in + c  ==  torch_w[:, c, k]
    p['conv1_w'] = nrm((3 * EMB, HIDDEN))
    p['conv1_b'] = nrm((1, HIDDEN))
    p['conv2_w'] = nrm((3 * HIDDEN, HIDDEN))
    p['conv2_b'] = nrm((1, HIDDEN))
    # Linear weights stored transposed ([in, out]) so the kernel does x @ W
    p['lin1_w'] = nrm((HIDDEN, HIDDEN))
    p['lin1_b'] = nrm((1, HIDDEN))
    p['lin2_w'] = nrm((HIDDEN, CLASSES))
    p['lin2_b'] = nrm((1, CLASSES))
    return p


if __name__ == "__main__":
    key = jax.random.PRNGKey(0)
    pkey, tkey = jax.random.split(key)
    params = init_params(pkey)
    tokens = jax.random.randint(tkey, (B, T), 0, VOCAB, dtype=jnp.int32)
    lengths = jnp.full((B,), T, dtype=jnp.int32)   # accepted but unused (matches reference)
    out = forward(params, tokens, lengths)
    out = jax.block_until_ready(out)
    assert out.shape == (B, CLASSES), out.shape
    assert bool(jnp.all(jnp.isfinite(out)))
    print("KERNEL_OK")
</pallas_src>

<mosaic_0001>
module attributes {stable_mosaic.version = 11 : i64} {
  func.func @_cnn_fused_kernel(%arg0: memref<16x2xi32, #tpu.memory_space<vmem>>, %arg1: memref<200x32xf32, #tpu.memory_space<vmem>>, %arg2: memref<96x32xf32, #tpu.memory_space<vmem>>, %arg3: memref<1x32xf32, #tpu.memory_space<vmem>>, %arg4: memref<96x32xf32, #tpu.memory_space<vmem>>, %arg5: memref<1x32xf32, #tpu.memory_space<vmem>>, %arg6: memref<32x32xf32, #tpu.memory_space<vmem>>, %arg7: memref<1x32xf32, #tpu.memory_space<vmem>>, %arg8: memref<32x6xf32, #tpu.memory_space<vmem>>, %arg9: memref<1x6xf32, #tpu.memory_space<vmem>>, %arg10: memref<2x6xf32, #tpu.memory_space<vmem>>) attributes {dimension_semantics = [], scalar_prefetch = 0 : i64, scratch_operands = 0 : i64, tpu.core_type = #tpu.core_type<tc>} {
    %c0 = arith.constant 0 : index
    %c0_0 = arith.constant 0 : index
    %0 = vector.load %arg1[%c0, %c0_0] : memref<200x32xf32, #tpu.memory_space<vmem>>, vector<200x32xf32>
    %c0_1 = arith.constant 0 : index
    %c0_2 = arith.constant 0 : index
    %1 = vector.load %arg2[%c0_1, %c0_2] : memref<96x32xf32, #tpu.memory_space<vmem>>, vector<96x32xf32>
    %c0_3 = arith.constant 0 : index
    %c0_4 = arith.constant 0 : index
    %2 = vector.load %arg3[%c0_3, %c0_4] : memref<1x32xf32, #tpu.memory_space<vmem>>, vector<1x32xf32>
    %c0_5 = arith.constant 0 : index
    %c0_6 = arith.constant 0 : index
    %3 = vector.load %arg4[%c0_5, %c0_6] : memref<96x32xf32, #tpu.memory_space<vmem>>, vector<96x32xf32>
    %c0_7 = arith.constant 0 : index
    %c0_8 = arith.constant 0 : index
    %4 = vector.load %arg5[%c0_7, %c0_8] : memref<1x32xf32, #tpu.memory_space<vmem>>, vector<1x32xf32>
    %5 = tpu.iota {dimensions = array<i32: 1>} : vector<16x200xi32>
    %c0_9 = arith.constant 0 : index
    %c0_10 = arith.constant 0 : index
    %6 = vector.load %arg0[%c0_9, %c0_10] : memref<16x2xi32, #tpu.memory_space<vmem>>, vector<16x1xi32>
    %7 = vector.broadcast %6 : vector<16x1xi32> to vector<16x200xi32>
    %8 = arith.cmpi eq, %5, %7 : vector<16x200xi32>
    %9 = arith.extui %8 : vector<16x200xi1> to vector<16x200xi32>
    %10 = arith.sitofp %9 : vector<16x200xi32> to vector<16x200xf32>
    %cst = arith.constant dense<0.000000e+00> : vector<16x32xf32>
    %11 = tpu.matmul %10, %0, %cst {dimension_numbers = #tpu.dot_dimension_numbers<[1], [0], [0], [1], [0, 0, 1, 1], [], []>} : vector<16x200xf32>, vector<200x32xf32>, vector<16x32xf32> -> vector<16x32xf32>
    %12 = vector.extract_strided_slice %11 {offsets = [0, 0], sizes = [14, 32], strides = [1, 1]} : vector<16x32xf32> to vector<14x32xf32>
    %13 = vector.extract_strided_slice %11 {offsets = [1, 0], sizes = [14, 32], strides = [1, 1]} : vector<16x32xf32> to vector<14x32xf32>
    %14 = vector.extract_strided_slice %11 {offsets = [2, 0], sizes = [14, 32], strides = [1, 1]} : vector<16x32xf32> to vector<14x32xf32>
    %15 = tpu.concatenate %12, %13, %14 in 1 : vector<14x32xf32>, vector<14x32xf32>, vector<14x32xf32> -> vector<14x96xf32>
    %cst_11 = arith.constant dense<0.000000e+00> : vector<14x32xf32>
    %16 = tpu.matmul %15, %1, %cst_11 {dimension_numbers = #tpu.dot_dimension_numbers<[1], [0], [0], [1], [0, 0, 1, 1], [], []>} : vector<14x96xf32>, vector<96x32xf32>, vector<14x32xf32> -> vector<14x32xf32>
    %17 = vector.broadcast %2 : vector<1x32xf32> to vector<14x32xf32>
    %18 = arith.addf %16, %17 : vector<14x32xf32>
    %cst_12 = arith.constant 0.000000e+00 : f32
    %19 = vector.broadcast %cst_12 : f32 to vector<14x32xf32>
    %20 = arith.maximumf %18, %19 : vector<14x32xf32>
    %21 = vector.extract_strided_slice %20 {offsets = [0, 0], sizes = [12, 32], strides = [1, 1]} : vector<14x32xf32> to vector<12x32xf32>
    %22 = vector.extract_strided_slice %20 {offsets = [1, 0], sizes = [12, 32], strides = [1, 1]} : vector<14x32xf32> to vector<12x32xf32>
    %23 = vector.extract_strided_slice %20 {offsets = [2, 0], sizes = [12, 32], strides = [1, 1]} : vector<14x32xf32> to vector<12x32xf32>
    %24 = tpu.concatenate %21, %22, %23 in 1 : vector<12x32xf32>, vector<12x32xf32>, vector<12x32xf32> -> vector<12x96xf32>
    %cst_13 = arith.constant dense<0.000000e+00> : vector<12x32xf32>
    %25 = tpu.matmul %24, %3, %cst_13 {dimension_numbers = #tpu.dot_dimension_numbers<[1], [0], [0], [1], [0, 0, 1, 1], [], []>} : vector<12x96xf32>, vector<96x32xf32>, vector<12x32xf32> -> vector<12x32xf32>
    %26 = vector.broadcast %4 : vector<1x32xf32> to vector<12x32xf32>
    %27 = arith.addf %25, %26 : vector<12x32xf32>
    %cst_14 = arith.constant 0.000000e+00 : f32
    %28 = vector.broadcast %cst_14 : f32 to vector<12x32xf32>
    %29 = arith.maximumf %27, %28 : vector<12x32xf32>
    %cst_15 = arith.constant dense<0xFF800000> : vector<32xf32>
    %30 = vector.multi_reduction <maximumf>, %29, %cst_15 [0] : vector<12x32xf32> to vector<32xf32>
    %31 = vector.shape_cast %30 : vector<32xf32> to vector<1x32xf32>
    %c0_16 = arith.constant 0 : index
    %c1 = arith.constant 1 : index
    %32 = vector.load %arg0[%c0_16, %c1] : memref<16x2xi32, #tpu.memory_space<vmem>>, vector<16x1xi32>
    %33 = vector.broadcast %32 : vector<16x1xi32> to vector<16x200xi32>
    %34 = arith.cmpi eq, %5, %33 : vector<16x200xi32>
    %35 = arith.extui %34 : vector<16x200xi1> to vector<16x200xi32>
    %36 = arith.sitofp %35 : vector<16x200xi32> to vector<16x200xf32>
    %cst_17 = arith.constant dense<0.000000e+00> : vector<16x32xf32>
    %37 = tpu.matmul %36, %0, %cst_17 {dimension_numbers = #tpu.dot_dimension_numbers<[1], [0], [0], [1], [0, 0, 1, 1], [], []>} : vector<16x200xf32>, vector<200x32xf32>, vector<16x32xf32> -> vector<16x32xf32>
    %38 = vector.extract_strided_slice %37 {offsets = [0, 0], sizes = [14, 32], strides = [1, 1]} : vector<16x32xf32> to vector<14x32xf32>
    %39 = vector.extract_strided_slice %37 {offsets = [1, 0], sizes = [14, 32], strides = [1, 1]} : vector<16x32xf32> to vector<14x32xf32>
    %40 = vector.extract_strided_slice %37 {offsets = [2, 0], sizes = [14, 32], strides = [1, 1]} : vector<16x32xf32> to vector<14x32xf32>
    %41 = tpu.concatenate %38, %39, %40 in 1 : vector<14x32xf32>, vector<14x32xf32>, vector<14x32xf32> -> vector<14x96xf32>
    %cst_18 = arith.constant dense<0.000000e+00> : vector<14x32xf32>
    %42 = tpu.matmul %41, %1, %cst_18 {dimension_numbers = #tpu.dot_dimension_numbers<[1], [0], [0], [1], [0, 0, 1, 1], [], []>} : vector<14x96xf32>, vector<96x32xf32>, vector<14x32xf32> -> vector<14x32xf32>
    %43 = vector.broadcast %2 : vector<1x32xf32> to vector<14x32xf32>
    %44 = arith.addf %42, %43 : vector<14x32xf32>
    %cst_19 = arith.constant 0.000000e+00 : f32
    %45 = vector.broadcast %cst_19 : f32 to vector<14x32xf32>
    %46 = arith.maximumf %44, %45 : vector<14x32xf32>
    %47 = vector.extract_strided_slice %46 {offsets = [0, 0], sizes = [12, 32], strides = [1, 1]} : vector<14x32xf32> to vector<12x32xf32>
    %48 = vector.extract_strided_slice %46 {offsets = [1, 0], sizes = [12, 32], strides = [1, 1]} : vector<14x32xf32> to vector<12x32xf32>
    %49 = vector.extract_strided_slice %46 {offsets = [2, 0], sizes = [12, 32], strides = [1, 1]} : vector<14x32xf32> to vector<12x32xf32>
    %50 = tpu.concatenate %47, %48, %49 in 1 : vector<12x32xf32>, vector<12x32xf32>, vector<12x32xf32> -> vector<12x96xf32>
    %cst_20 = arith.constant dense<0.000000e+00> : vector<12x32xf32>
    %51 = tpu.matmul %50, %3, %cst_20 {dimension_numbers = #tpu.dot_dimension_numbers<[1], [0], [0], [1], [0, 0, 1, 1], [], []>} : vector<12x96xf32>, vector<96x32xf32>, vector<12x32xf32> -> vector<12x32xf32>
    %52 = vector.broadcast %4 : vector<1x32xf32> to vector<12x32xf32>
    %53 = arith.addf %51, %52 : vector<12x32xf32>
    %cst_21 = arith.constant 0.000000e+00 : f32
    %54 = vector.broadcast %cst_21 : f32 to vector<12x32xf32>
    %55 = arith.maximumf %53, %54 : vector<12x32xf32>
    %cst_22 = arith.constant dense<0xFF800000> : vector<32xf32>
    %56 = vector.multi_reduction <maximumf>, %55, %cst_22 [0] : vector<12x32xf32> to vector<32xf32>
    %57 = vector.shape_cast %56 : vector<32xf32> to vector<1x32xf32>
    %58 = tpu.concatenate %31, %57 in 0 : vector<1x32xf32>, vector<1x32xf32> -> vector<2x32xf32>
    %c0_23 = arith.constant 0 : index
    %c0_24 = arith.constant 0 : index
    %59 = vector.load %arg6[%c0_23, %c0_24] : memref<32x32xf32, #tpu.memory_space<vmem>>, vector<32x32xf32>
    %cst_25 = arith.constant dense<0.000000e+00> : vector<2x32xf32>
    %60 = tpu.matmul %58, %59, %cst_25 {dimension_numbers = #tpu.dot_dimension_numbers<[1], [0], [0], [1], [0, 0, 1, 1], [], []>} : vector<2x32xf32>, vector<32x32xf32>, vector<2x32xf32> -> vector<2x32xf32>
    %c0_26 = arith.constant 0 : index
    %c0_27 = arith.constant 0 : index
    %61 = vector.load %arg7[%c0_26, %c0_27] : memref<1x32xf32, #tpu.memory_space<vmem>>, vector<1x32xf32>
    %62 = vector.broadcast %61 : vector<1x32xf32> to vector<2x32xf32>
    %63 = arith.addf %60, %62 : vector<2x32xf32>
    %cst_28 = arith.constant 0.000000e+00 : f32
    %64 = vector.broadcast %cst_28 : f32 to vector<2x32xf32>
    %65 = arith.maximumf %63, %64 : vector<2x32xf32>
    %c0_29 = arith.constant 0 : index
    %c0_30 = arith.constant 0 : index
    %66 = vector.load %arg8[%c0_29, %c0_30] : memref<32x6xf32, #tpu.memory_space<vmem>>, vector<32x6xf32>
    %cst_31 = arith.constant dense<0.000000e+00> : vector<2x6xf32>
    %67 = tpu.matmul %65, %66, %cst_31 {dimension_numbers = #tpu.dot_dimension_numbers<[1], [0], [0], [1], [0, 0, 1, 1], [], []>} : vector<2x32xf32>, vector<32x6xf32>, vector<2x6xf32> -> vector<2x6xf32>
    %c0_32 = arith.constant 0 : index
    %c0_33 = arith.constant 0 : index
    %68 = vector.load %arg9[%c0_32, %c0_33] : memref<1x6xf32, #tpu.memory_space<vmem>>, vector<1x6xf32>
    %69 = vector.broadcast %68 : vector<1x6xf32> to vector<2x6xf32>
    %70 = arith.addf %67, %69 : vector<2x6xf32>
    %c0_34 = arith.constant 0 : index
    %c0_35 = arith.constant 0 : index
    %71 = vector.load %arg10[%c0_34, %c0_35] : memref<2x6xf32, #tpu.memory_space<vmem>>, vector<2x6xf32>
    tpu.vector_store %arg10[%c0_34, %c0_35], %70 {strides = array<i32>} : memref<2x6xf32, #tpu.memory_space<vmem>>, vector<2x6xf32>,
    return
  }
}

</mosaic_0001>

<bundles_post_ra>
// kernel: cnn_forward.1
= control target key start
LH: loop header
LB: loop body
LE: loop exit
PB: predicated region body
PF: predicated region fallthrough
CT: control target
= control target key end

     0   :  { %v1384_v2 = vmov 0   ;;  %v1385_v3 = vmov 0.0|0.0   ;;  %s1872_s0 = inlined_call_operand.vmem [shape: s32[16,2], index: 0, kind: input, shape index: {}]   ;;  %s1873_s1 = inlined_call_operand.vmem [shape: f32[200,32], index: 1, kind: input, shape index: {}]   ;;  %s1874_s2 = inlined_call_operand.vmem [shape: f32[96,32], index: 2, kind: input, shape index: {}]   ;;  %s1875_s3 = inlined_call_operand.vmem [shape: f32[1,32], index: 3, kind: input, shape index: {}]   ;;  %s1876_s4 = inlined_call_operand.vmem [shape: f32[96,32], index: 4, kind: input, shape index: {}]   ;;  %s1877_s5 = inlined_call_operand.vmem [shape: f32[1,32], index: 5, kind: input, shape index: {}]   ;;  %s1878_s6 = inlined_call_operand.vmem [shape: f32[32,32], index: 6, kind: input, shape index: {}]   ;;  %s1879_s7 = inlined_call_operand.vmem [shape: f32[1,32], index: 7, kind: input, shape index: {}]   ;;  %s1880_s8 = inlined_call_operand.vmem [shape: f32[32,6], index: 8, kind: input, shape index: {}]   ;;  %s1881_s9 = inlined_call_operand.vmem [shape: f32[1,6], index: 9, kind: input, shape index: {}]   ;;  %s1882_s10 = inlined_call_operand.hbm [shape: f32[2,6], index: 10, kind: output, shape index: {}]  }
   0x1   :  { %v1451_v0 = vld [vmem:[%s1872_s0] sm:$0xff]  ;;  %1357 = vset.pattern.permute.xlu0 %v1384_v2  ;;  %1168 = vmatprep.subr.bf16.mxu0 %v1385_v3  ;;  %v37_v4 = vld [vmem:[%s1873_s1 + $0x8] sm:$0xff]  ;;  %v38_v5 = vld [vmem:[%s1873_s1 + $0x10] sm:$0xff] }
   0x2   :  { %v36_v1 = vld [vmem:[%s1873_s1] sm:$0xff]  ;;  %v39_v6 = vld [vmem:[%s1873_s1 + $0x18] sm:$0xff]  ;;  %93 = vperm.xlu0 %1357, %v1451_v0   ;;  %v1472_v8 = vld [vmem:[%s1872_s0 + $0x8] sm:$0xff] }
   0x3   :  { %v1467_v7 = vpack.c.bf16 %v37_v4, %v36_v1  ;;  %v1475_v9 = vpack.c.bf16 %v39_v6, %v38_v5  ;;  %v40_v10 = vld [vmem:[%s1873_s1 + $0x20] sm:$0xff]  ;;  %v41_v11 = vld [vmem:[%s1873_s1 + $0x28] sm:$0xff]  ;;  %v42_v13 = vld [vmem:[%s1873_s1 + $0x30] sm:$0xff] }
   0x4   :  { %v1486_v12 = vpack.c.bf16 %v41_v11, %v40_v10  ;;  %v43_v14 = vld [vmem:[%s1873_s1 + $0x38] sm:$0xff] }
   0x5   :  { %1170 = vmatpush1.bf16.msra.mxu0 %v1467_v7 }
   0x6   :  { %1171 = vmatprep.subr.bf16.mxu0 %v1385_v3  ;;  %96 = vperm.xlu0 %1357, %v1472_v8  }
   0x9   :  { %1173 = vmatpush1.bf16.msra.mxu0 %v1475_v9 }
   0xa   :  { %1174 = vmatprep.subr.bf16.mxu0 %v1385_v3 }
   0xb   :  { %15 = vsyncpa [#allocation3], 0  ;;  %v1496_v15 = vpack.c.bf16 %v43_v14, %v42_v13  ;;  %v44_v16 = vld [vmem:[%s1873_s1 + $0x40] sm:$0xff]  ;;  %v45_v17 = vld [vmem:[%s1873_s1 + $0x48] sm:$0xff]  ;;  %v1386_v40 = vmov 0.0   ;;  %v87_v42 = vlaneseq  ;;  %vm110_vm0 = vcmask 588800  }
   0xc   :  { %v1506_v18 = vpack.c.bf16 %v45_v17, %v44_v16  ;;  %v46_v19 = vld [vmem:[%s1873_s1 + $0x50] sm:$0xff]  ;;  %v47_v20 = vld [vmem:[%s1873_s1 + $0x58] sm:$0xff]  ;;  %v48_v22 = vld [vmem:[%s1873_s1 + $0x60] sm:$0xff]  ;;  %v1387_v48 = vmov 1.0   ;;  %vm204_vm5 = vcmask 1045504   ;;  %vm194_vm6 = vcmask 1046528  }
   0xd   :  { %1176 = vmatpush1.bf16.msra.mxu0 %v1486_v12  ;;  %v1516_v21 = vpack.c.bf16 %v47_v20, %v46_v19  ;;  %v49_v23 = vld [vmem:[%s1873_s1 + $0x68] sm:$0xff]  ;;  %v50_v25 = vld [vmem:[%s1873_s1 + $0x70] sm:$0xff]  ;;  %v51_v26 = vld [vmem:[%s1873_s1 + $0x78] sm:$0xff]  ;;  %v1587_v43 = vand.u32 127, %v87_v42  ;;  %s1388_s26 = smov 32   ;;  %vm217_vm7 = vcmask 523264  }
   0xe   :  { %1177 = vmatprep.subr.bf16.mxu0 %v1385_v3  ;;  %v1526_v24 = vpack.c.bf16 %v49_v23, %v48_v22  ;;  %v1536_v27 = vpack.c.bf16 %v51_v26, %v50_v25  ;;  %v52_v28 = vld [vmem:[%s1873_s1 + $0x80] sm:$0xff]  ;;  %v53_v29 = vld [vmem:[%s1873_s1 + $0x88] sm:$0xff]  ;;  %v54_v31 = vld [vmem:[%s1873_s1 + $0x90] sm:$0xff]  ;;  %vm214_vm8 = vcmask 261120   ;;  %vm226_vm9 = vcmask 785408   ;;  %s1392_s27 = smov [#allocation2]  }
   0xf   :  { %v1546_v30 = vpack.c.bf16 %v53_v29, %v52_v28  ;;  %v55_v32 = vld [vmem:[%s1873_s1 + $0x98] sm:$0xff]  ;;  %v56_v34 = vld [vmem:[%s1873_s1 + $0xa0] sm:$0xff]  ;;  %v57_v35 = vld [vmem:[%s1873_s1 + $0xa8] sm:$0xff]  ;;  %v1590_v44 = vadd.s32 128, %v1587_v43  ;;  %vm424_vm14 = vcmask 257024   ;;  %vm1391_vm15 = vmmov 0  }
  0x10   :  { %v1556_v33 = vpack.c.bf16 %v55_v32, %v54_v31  ;;  %v1566_v36 = vpack.c.bf16 %v57_v35, %v56_v34  ;;  %v58_v37 = vld [vmem:[%s1873_s1 + $0xb0] sm:$0xff]  ;;  %v59_v38 = vld [vmem:[%s1873_s1 + $0xb8] sm:$0xff]  ;;  %v1584_v41 = vld [vmem:[%s1873_s1 + $0xc0] sm:$0xff]  ;;  %v1390_v35 = vmov 1   ;;  %s934_s28 = sshll.u32 %s1392_s27, 4  ;;  %s935_s28 = int_to_ptr.vmem [resolvable:$true] %s934_s28 }
  0x11   :  { %1179 = vmatpush1.bf16.msra.mxu0 %v1496_v15  ;;  %v1576_v39 = vpack.c.bf16 %v59_v38, %v58_v37  ;;  %v61_v50 = vld [vmem:[%s1874_s2] sm:$0xff]  ;;  %v62_v51 = vld [vmem:[%s1874_s2 + $0x8] sm:$0xff]  ;;  %v63_v52 = vld [vmem:[%s1874_s2 + $0x10] sm:$0xff]  ;;  %1358 = vset.pattern.permute.xlu0 %v1390_v35  ;;  %p1365_p1 = scmp.lt.s32.totalorder %s935_s28, %s935_s28 }
  0x12   :  { %1180 = vmatprep.subr.bf16.mxu0 %v1385_v3  ;;  %v1204_v53 = vpack.c.bf16 %v62_v51, %v61_v50  ;;  %v64_v54 = vld [vmem:[%s1874_s2 + $0x18] sm:$0xff]  ;;  %v65_v56 = vld [vmem:[%s1874_s2 + $0x20] sm:$0xff]  ;;  %v66_v57 = vld [vmem:[%s1874_s2 + $0x28] sm:$0xff]  ;;  %1359 = vset.pattern.permute.xlu1 %v1390_v35 }
  0x13   :  { %v1208_v55 = vpack.c.bf16 %v64_v54, %v63_v52  ;;  %v1212_v58 = vpack.c.bf16 %v66_v57, %v65_v56  ;;  %v67_v59 = vld [vmem:[%s1874_s2 + $0x30] sm:$0xff]  ;;  %v68_v60 = vld [vmem:[%s1874_s2 + $0x38] sm:$0xff]  ;;  %v69_v62 = vld [vmem:[%s1874_s2 + $0x40] sm:$0xff] }
  0x14   :  { %1205 = vmatprep.subr.bf16.mxu1 %v1204_v53  ;;  %v1216_v61 = vpack.c.bf16 %v68_v60, %v67_v59  ;;  %v70_v63 = vld [vmem:[%s1874_s2 + $0x48] sm:$0xff]  ;;  %v71_v2 = vld [vmem:[%s1874_s2 + $0x50] sm:$0xff]  ;;  %v72_v4 = vld [vmem:[%s1874_s2 + $0x58] sm:$0xff]  ;;  %s1389_s2 = smov 64  }
  0x15   :  { %1182 = vmatpush1.bf16.msra.mxu0 %v1506_v18  ;;  %1207 = vmatpush3.bf16.msra.mxu1 %v1204_v53  ;;  %v1220_v1 = vpack.c.bf16 %v70_v63, %v69_v62  ;;  %v1224_v5 = vpack.c.bf16 %v72_v4, %v71_v2  ;;  %v74_v37 = vld [vmem:[%s1876_s4] sm:$0xff]  ;;  %v75_v38 = vld [vmem:[%s1876_s4 + $0x8] sm:$0xff]  ;;  %v76_v42 = vld [vmem:[%s1876_s4 + $0x10] sm:$0xff] }
  0x16   :  { %1183 = vmatprep.subr.bf16.mxu0 %v1385_v3  ;;  %1209 = vmatprep.subr.bf16.mxu1 %v1208_v55  ;;  %v79_v50 = vld [vmem:[%s1876_s4 + $0x28] sm:$0xff]  ;;  %v80_v52 = vld [vmem:[%s1876_s4 + $0x30] sm:$0xff]  ;;  %v85_v59 = vld [vmem:[%s1876_s4 + $0x58] sm:$0xff] }
  0x17   :  { %v83_v56 = vld [vmem:[%s1876_s4 + $0x48] sm:$0xff] }
  0x19   :  { %1185 = vmatpush1.bf16.msra.mxu0 %v1516_v21  ;;  %1211 = vmatpush3.bf16.msra.mxu1 %v1208_v55 }
  0x1a   :  { %1186 = vmatprep.subr.bf16.mxu0 %v1385_v3  ;;  %1213 = vmatprep.subr.bf16.mxu1 %v1212_v58 }
  0x1d   :  { %1188 = vmatpush1.bf16.msra.mxu0 %v1526_v24  ;;  %1215 = vmatpush3.bf16.msra.mxu1 %v1212_v58 }
  0x1e   :  { %1189 = vmatprep.subr.bf16.mxu0 %v1385_v3  ;;  %1217 = vmatprep.subr.bf16.mxu1 %v1216_v61 }
  0x21   :  { %1191 = vmatpush1.bf16.msra.mxu0 %v1536_v27  ;;  %1219 = vmatpush3.bf16.msra.mxu1 %v1216_v61 }
  0x22   :  { %1192 = vmatprep.subr.bf16.mxu0 %v1385_v3  ;;  %1221 = vmatprep.subr.bf16.mxu1 %v1220_v1 }
  0x25   :  { %1194 = vmatpush1.bf16.msra.mxu0 %v1546_v30  ;;  %1223 = vmatpush3.bf16.msra.mxu1 %v1220_v1 }
  0x26   :  { %1195 = vmatprep.subr.bf16.mxu0 %v1385_v3  ;;  %1225 = vmatprep.subr.bf16.mxu1 %v1224_v5 }
  0x29   :  { %1197 = vmatpush1.bf16.msra.mxu0 %v1556_v33  ;;  %1227 = vmatpush3.bf16.msra.mxu1 %v1224_v5 }
  0x2a   :  { %1198 = vmatprep.subr.bf16.mxu0 %v1385_v3 }
  0x2d   :  { %1200 = vmatpush1.bf16.msra.mxu0 %v1566_v36 }
  0x2e   :  { %1201 = vmatprep.subr.bf16.mxu0 %v1385_v3 }
  0x31   :  { %1203 = vmatpush1.bf16.msra.mxu0 %v1576_v39 }
  0x32   :  { %165 = vmatprep.subr.mxu0 %v1386_v40 }
  0x35   :  { %166 = vmatpush1.msra.mxu0 %v1584_v41 }
  0x36   :  { %1289 = vmatprep.subr.bf16.mxu0 %v1204_v53 }
  0x81   :  { %v94_v45 = vpop.permute.xlu0 %93 }
  0x82   :  { %vm99_vm1 = vcmp.eq.s32.totalorder %v1590_v44, %v94_v45  ;;  %vm98_vm2 = vcmp.eq.s32.totalorder %v1587_v43, %v94_v45  ;;  %v1659_v45 = vpack.c.bf16 %v75_v38, %v74_v37 }
  0x83   :  { %v943_v46 = vsel %vm99_vm1, 1.0, %v1386_v40  ;;  %vm926_vm1 = vcmask 41984  }
  0x84   :  { %946 = vmatprep.mubr.msk.f32.mxu0 %vm110_vm0, %v943_v46  ;;  %v77_v46 = vld [vmem:[%s1876_s4 + $0x18] sm:$0xff]  ;;  %1229 = vmatprep.subr.bf16.mxu1 %v1659_v45 }
  0x85   :  { %v97_v47 = vpop.permute.xlu0 %96  ;;  %947 = vmatmul.mubr.msk.f32.vlgmr.msra.gmra.mrb[0].mxu0 %vm98_vm2, %v1387_v48 }
  0x86   :  { %vm101_vm3 = vcmp.eq.s32.totalorder %v1590_v44, %v97_v47  ;;  %vm100_vm4 = vcmp.eq.s32.totalorder %v1587_v43, %v97_v47  ;;  %1291 = vmatpush3.bf16.msra.mxu0 %v1204_v53  ;;  %v1664_v47 = vpack.c.bf16 %v77_v46, %v76_v42  ;;  %v81_v53 = vld [vmem:[%s1876_s4 + $0x38] sm:$0xff] }
  0x87   :  { %v945_v49 = vsel %vm101_vm3, 1.0, %v1386_v40  ;;  %1293 = vmatprep.subr.bf16.mxu0 %v1208_v55  ;;  %v1686_v54 = vpack.c.bf16 %v81_v53, %v80_v52 }
  0x88   :  { %948 = vmatprep.mubr.msk.f32.mxu0 %vm110_vm0, %v945_v49  ;;  %v78_v49 = vld [vmem:[%s1876_s4 + $0x20] sm:$0xff] }
  0x89   :  { %949 = vmatmul.mubr.msk.f32.gmra.mrb[2].mxu0 %vm100_vm4, %v1387_v48  ;;  %v1676_v51 = vpack.c.bf16 %v79_v50, %v78_v49 }
  0x8a   :  { %1295 = vmatpush3.bf16.msra.mxu0 %v1208_v55  ;;  %v82_v55 = vld [vmem:[%s1876_s4 + $0x40] sm:$0xff] }
  0x8b   :  { %1297 = vmatprep.subr.bf16.mxu0 %v1212_v58  ;;  %v1696_v57 = vpack.c.bf16 %v83_v56, %v82_v55 }
  0x8e   :  { %1299 = vmatpush3.bf16.msra.mxu0 %v1212_v58  ;;  %v84_v58 = vld [vmem:[%s1876_s4 + $0x50] sm:$0xff] }
  0x8f   :  { %1301 = vmatprep.subr.bf16.mxu0 %v1216_v61  ;;  %v1707_v60 = vpack.c.bf16 %v85_v59, %v84_v58 }
  0x92   :  { %1303 = vmatpush3.bf16.msra.mxu0 %v1216_v61  ;;  %v1713_v61 = vld [vmem:[%s1875_s3] ss:$0 sm:$0xff] }
  0x93   :  { %1305 = vmatprep.subr.bf16.mxu0 %v1220_v1 }
  0x96   :  { %1307 = vmatpush3.bf16.msra.mxu0 %v1220_v1 }
  0x97   :  { %1309 = vmatprep.subr.bf16.mxu0 %v1224_v5 }
  0x9a   :  { %1311 = vmatpush3.bf16.msra.mxu0 %v1224_v5 }
  0x9b   :  { %1313 = vmatprep.subr.bf16.mxu0 %v1659_v45 }
 0x158   :  { %v183_v6 = vpop.f32.mrb[0].mxu0 }
 0x159   :  { %v185_v10 = vpop.f32.mrb[1].mxu0  ;;  %v195_v13 = vrot.slane %v183_v6, 1  ;;  %v205_v14 = vrot.slane %v183_v6, 2 }
 0x15c   :  { %v188_v11 = vpop.f32.mrb[2].mxu0 }
 0x15d   :  { %v206_v16 = vrot.slane %v188_v11, 2  ;;  %v190_v17 = vpop.f32.mrb[3].mxu0  ;;  %v196_v19 = vrot.slane %v188_v11, 1 }
 0x15f   :  { %200 = vrot.lane.b32.xlu1 %v196_v19, %s1388_s26  ;;  %v207_v20 = vsel %vm204_vm5, %v205_v14, %v206_v16  ;;  %v197_v22 = vsel %vm194_vm6, %v195_v13, %v196_v19 }
 0x160   :  { %208 = vrot.lane.b32.xlu0 %v207_v20, %s1389_s2 }
 0x163   :  { %198 = vrot.lane.b32.xlu1 %v197_v22, %s1388_s26 }
 0x167   :  { %210 = vrot.lane.b32.xlu1 %v206_v16, %s1389_s2 }
 0x1d1   :  { %v201_v23 = vpop.permute.xlu1 %200 }
 0x1d2   :  { %v209_v26 = vpop.permute.xlu0 %208  ;;  %v216_v31 = vsel %vm214_vm8, %v188_v11, %v201_v23 }
 0x1d5   :  { %v199_v25 = vpop.permute.xlu1 %198 }
 0x1d6   :  { %v215_v28 = vsel %vm214_vm8, %v183_v6, %v199_v25 }
 0x1d7   :  { %v218_v29 = vsel %vm217_vm7, %v215_v28, %v209_v26 }
 0x1d8   :  { %1062 = vmatprep.mubr.msk.f32.mxu1 %vm226_vm9, %v218_v29 }
 0x1d9   :  { %v211_v32 = vpop.permute.xlu1 %210 }
 0x1da   :  { %v219_v34 = vsel %vm217_vm7, %v216_v31, %v211_v32 }
 0x1db   :  { %1063 = vmatmul.mubr.msk.f32.vlgmr.msra.gmra.mrb[0].mxu1 %vm226_vm9, %v219_v34 }
 0x1dc   :  { %1231 = vmatpush3.bf16.msra.mxu1 %v1659_v45 }
 0x1dd   :  { %1233 = vmatprep.subr.bf16.mxu1 %v1664_v47 }
 0x1e0   :  { %1235 = vmatpush3.bf16.msra.mxu1 %v1664_v47 }
 0x1e1   :  { %1237 = vmatprep.subr.bf16.mxu1 %v1676_v51 }
 0x1e4   :  { %1239 = vmatpush3.bf16.msra.mxu1 %v1676_v51 }
 0x1e5   :  { %1241 = vmatprep.subr.bf16.mxu1 %v1686_v54 }
 0x1e8   :  { %1243 = vmatpush3.bf16.msra.mxu1 %v1686_v54 }
 0x1e9   :  { %1245 = vmatprep.subr.bf16.mxu1 %v1696_v57 }
 0x1ec   :  { %1247 = vmatpush3.bf16.msra.mxu1 %v1696_v57 }
 0x1ed   :  { %1249 = vmatprep.subr.bf16.mxu1 %v1707_v60 }
 0x1f0   :  { %1251 = vmatpush3.bf16.msra.mxu1 %v1707_v60 }
 0x1f1   :  { %1252 = vmatprep.subr.bf16.mxu1 %v1385_v3 }
 0x2ae   :  { %v1064_v62 = vpop.f32.mrb[0].mxu1 }
 0x2af   :  { %v305_v63 = vadd.f32 %v1064_v62, %v1713_v61  ;;  %v299_v1 = vpop.f32.mrb[1].mxu1 }
 0x2b0   :  { %v300_v2 = vadd.f32 %v1713_v61, %v299_v1 }
 0x2b1   :  { %v309_v4 = vmax.f32 %v305_v63, 0.0 }
 0x2b2   :  { %v308_v5 = vmax.f32 %v300_v2, 0.0 }
 0x2b3   :  { %v313_v6 = vrot.slane %v309_v4, 1  ;;  %v322_v14 = vrot.slane %v309_v4, 2 }
 0x2b4   :  { %v312_v10 = vrot.slane %v308_v5, 1  ;;  %v321_v11 = vrot.slane %v308_v5, 2 }
 0x2b5   :  { %317 = vrot.lane.b32.xlu1 %v313_v6, %s1388_s26 }
 0x2b6   :  { %v314_v13 = vsel %vm194_vm6, %v312_v10, %v313_v6  ;;  %v323_v16 = vsel %vm204_vm5, %v321_v11, %v322_v14 }
 0x2b7   :  { %315 = vrot.lane.b32.xlu0 %v314_v13, %s1388_s26 }
 0x2b9   :  { %326 = vrot.lane.b32.xlu1 %v322_v14, %s1389_s2  ;;  %v757_v14 = vld [vmem:[%s1878_s6] sm:$0xff] }
 0x2bb   :  { %324 = vrot.lane.b32.xlu0 %v323_v16, %s1389_s2  ;;  %v758_v16 = vld [vmem:[%s1878_s6 + $0x8] sm:$0xff] }
 0x2bd   :  { %437 = vperm.xlu1 %1359, %v1472_v8  }
 0x2bf   :  { %434 = vperm.xlu0 %1358, %v1451_v0  }
 0x327   :  { %v318_v17 = vpop.permute.xlu1 %317 }
 0x328   :  { %v331_v25 = vsel %vm214_vm8, %v309_v4, %v318_v17  ;;  %v1337_v17 = vpack.c.bf16 %v758_v16, %v757_v14 }
 0x329   :  { %v316_v19 = vpop.permute.xlu0 %315 }
 0x32a   :  { %v330_v22 = vsel %vm214_vm8, %v308_v5, %v316_v19  ;;  %v759_v19 = vld [vmem:[%s1878_s6 + $0x10] sm:$0xff] }
 0x32b   :  { %v327_v20 = vpop.permute.xlu1 %326 }
 0x32c   :  { %v333_v28 = vsel %vm217_vm7, %v331_v25, %v327_v20  ;;  %v760_v20 = vld [vmem:[%s1878_s6 + $0x18] sm:$0xff]  ;;  %v843_v25 = vld [vmem:[%s1880_s8 + $0x8] sm:$0xff] }
 0x32d   :  { %v325_v23 = vpop.permute.xlu0 %324 }
 0x32e   :  { %v332_v26 = vsel %vm217_vm7, %v330_v22, %v325_v23  ;;  %v1340_v22 = vpack.c.bf16 %v760_v20, %v759_v19  ;;  %v842_v23 = vld [vmem:[%s1880_s8] sm:$0xff] }
 0x32f   :  { %1089 = vmatprep.mubr.msk.f32.mxu1 %vm226_vm9, %v332_v26  ;;  %v1343_v26 = vpack.c.bf16 %v843_v25, %v842_v23 }
 0x330   :  { %1090 = vmatmul.mubr.msk.f32.vlgmr.msra.gmra.mrb[2].mxu1 %vm226_vm9, %v333_v28 }
 0x331   :  { %1254 = vmatpush1.bf16.msra.mxu1 %v1467_v7 }
 0x332   :  { %1255 = vmatprep.subr.bf16.mxu1 %v1385_v3 }
 0x335   :  { %1257 = vmatpush1.bf16.msra.mxu1 %v1475_v9 }
 0x336   :  { %1258 = vmatprep.subr.bf16.mxu1 %v1385_v3 }
 0x339   :  { %1260 = vmatpush1.bf16.msra.mxu1 %v1486_v12  ;;  %v1772_v12 = vld [vmem:[%s1877_s5] ss:$0 sm:$0xff] }
 0x33a   :  { %1261 = vmatprep.subr.bf16.mxu1 %v1385_v3 }
 0x33c   :  { %v438_v7 = vpop.permute.xlu1 %437 }
 0x33d   :  { %1263 = vmatpush1.bf16.msra.mxu1 %v1496_v15  ;;  %vm442_vm11 = vcmp.eq.s32.totalorder %v1590_v44, %v438_v7  ;;  %vm441_vm13 = vcmp.eq.s32.totalorder %v1587_v43, %v438_v7 }
 0x33e   :  { %1264 = vmatprep.subr.bf16.mxu1 %v1385_v3  ;;  %v435_v0 = vpop.permute.xlu0 %434  ;;  %v959_v9 = vsel %vm442_vm11, 1.0, %v1386_v40 }
 0x33f   :  { %vm440_vm10 = vcmp.eq.s32.totalorder %v1590_v44, %v435_v0  ;;  %vm439_vm12 = vcmp.eq.s32.totalorder %v1587_v43, %v435_v0 }
 0x340   :  { %v957_v8 = vsel %vm440_vm10, 1.0, %v1386_v40 }
 0x341   :  { %1266 = vmatpush1.bf16.msra.mxu1 %v1506_v18  ;;  %960 = vmatprep.mubr.msk.f32.mxu1 %vm110_vm0, %v957_v8 }
 0x342   :  { %1267 = vmatprep.subr.bf16.mxu1 %v1385_v3 }
 0x345   :  { %1269 = vmatpush1.bf16.msra.mxu1 %v1516_v21 }
 0x346   :  { %1270 = vmatprep.subr.bf16.mxu1 %v1385_v3 }
 0x349   :  { %1272 = vmatpush1.bf16.msra.mxu1 %v1526_v24 }
 0x34a   :  { %1273 = vmatprep.subr.bf16.mxu1 %v1385_v3 }
 0x34d   :  { %1275 = vmatpush1.bf16.msra.mxu1 %v1536_v27 }
 0x34e   :  { %1276 = vmatprep.subr.bf16.mxu1 %v1385_v3 }
 0x351   :  { %1278 = vmatpush1.bf16.msra.mxu1 %v1546_v30 }
 0x352   :  { %1279 = vmatprep.subr.bf16.mxu1 %v1385_v3 }
 0x355   :  { %1281 = vmatpush1.bf16.msra.mxu1 %v1556_v33 }
 0x356   :  { %1282 = vmatprep.subr.bf16.mxu1 %v1385_v3 }
 0x359   :  { %1284 = vmatpush1.bf16.msra.mxu1 %v1566_v36 }
 0x35a   :  { %1285 = vmatprep.subr.bf16.mxu1 %v1385_v3 }
 0x35d   :  { %1287 = vmatpush1.bf16.msra.mxu1 %v1576_v39 }
 0x35e   :  { %505 = vmatprep.subr.mxu1 %v1386_v40 }
 0x361   :  { %506 = vmatpush1.msra.mxu1 %v1584_v41 }
 0x362   :  { %961 = vmatmul.mubr.msk.f32.vlgmr.msra.gmra.mrb[4].mxu1 %vm439_vm12, %v1387_v48  ;;  %1342 = vmatprep.subr.bf16.mxu1 %v1385_v3 }
 0x363   :  { %962 = vmatprep.mubr.msk.f32.mxu1 %vm110_vm0, %v959_v9  ;;  %1344 = vmatpush3.bf16.msra.mxu1 %v1343_v26  ;;  %vm755_vm0 = vcmask 1040384  }
 0x364   :  { %1345 = vmatprep.subr.bf16.mxu1 %v1385_v3 }
 0x366   :  { %963 = vmatmul.mubr.msk.f32.gmra.mrb[6].mxu1 %vm441_vm13, %v1387_v48 }
 0x367   :  { %1165 = vmatprep.mubr.msk.f32.mxu1 %vm1391_vm15, %v1386_v40 }
 0x403   :  { %v1091_v15 = vpop.f32.mrb[2].mxu1 }
 0x404   :  { %v418_v18 = vadd.f32 %v1091_v15, %v1772_v12  ;;  %v412_v21 = vpop.f32.mrb[3].mxu1 }
 0x405   :  { %v413_v24 = vadd.f32 %v1772_v12, %v412_v21 }
 0x406   :  { %v422_v27 = vmax.f32 %v418_v18, 0.0 }
 0x407   :  { %v421_v30 = vmax.f32 %v413_v24, 0.0 }
 0x408   :  { %v425_v33 = vsel %vm424_vm14, %v422_v27, -inf }
 0x409   :  { %v423_v36 = vsel %vm214_vm8, %v421_v30, -inf }
 0x40a   :  { %v1778_v39 = vmax.f32 %v423_v36, %v425_v33 }
 0x40c   :  { %v427_v28 = vrot.slane %v1778_v39, 4 }
 0x40e   :  { %v428_v9 = vmax.f32 %v1778_v39, %v427_v28  ;;  %v844_v39 = vld [vmem:[%s1880_s8 + $0x10] sm:$0xff] }
 0x410   :  { %v429_v27 = vrot.slane %v428_v9, 2 }
 0x435   :  { %v523_v41 = vpop.f32.mrb[4].mxu1 }
 0x436   :  { %v525_v43 = vpop.f32.mrb[5].mxu1  ;;  %v534_v48 = vrot.slane %v523_v41, 1  ;;  %v543_v29 = vrot.slane %v523_v41, 2 }
 0x439   :  { %v528_v44 = vpop.f32.mrb[6].mxu1 }
 0x43a   :  { %v535_v31 = vrot.slane %v528_v44, 1  ;;  %v544_v32 = vrot.slane %v528_v44, 2  ;;  %v530_v34 = vpop.f32.mrb[7].mxu1 }
 0x43c   :  { %539 = vrot.lane.b32.xlu0 %v535_v31, %s1388_s26  ;;  %v536_v35 = vsel %vm194_vm6, %v534_v48, %v535_v31  ;;  %v545_v37 = vsel %vm204_vm5, %v543_v29, %v544_v32 }
 0x43d   :  { %537 = vrot.lane.b32.xlu1 %v536_v35, %s1388_s26  ;;  %v968_v35 = vld [vmem:[%s1879_s7] ss:$0 sm:$0xff] }
 0x440   :  { %548 = vrot.lane.b32.xlu0 %v544_v32, %s1389_s2  ;;  %v845_v32 = vld [vmem:[%s1880_s8 + $0x18] sm:$0xff]  ;;  %s1360_s8 = scalar_lea.vmem %s935_s28, 32 }
 0x441   :  { %546 = vrot.lane.b32.xlu1 %v545_v37, %s1389_s2  ;;  %v1346_v34 = vpack.c.bf16 %v845_v32, %v844_v39  ;;  %p1361_p0 = scmp.ne.s32.totalorder %s935_s28, %s1360_s8  ;;  %p1366_p2 = scmp.lt.s32.totalorder %s1360_s8, %s1360_s8 }
 0x443   :  { %1347 = vmatpush3.bf16.msra.mxu1 %v1346_v34  ;;  %p1367_p3 = por %p1366_p2, %p1365_p1 }
 0x445   :  { %p1368_p4 = pnand %p1367_p3, %p1361_p0 }
 0x4ae   :  { %v540_v38 = vpop.permute.xlu0 %539 }
 0x4af   :  { %v538_v42 = vpop.permute.xlu1 %537  ;;  %v553_v52 = vsel %vm214_vm8, %v528_v44, %v540_v38 }
 0x4b0   :  { %v552_v49 = vsel %vm214_vm8, %v523_v41, %v538_v42 }
 0x4b2   :  { %v549_v46 = vpop.permute.xlu0 %548 }
 0x4b3   :  { %v547_v50 = vpop.permute.xlu1 %546  ;;  %v555_v55 = vsel %vm217_vm7, %v553_v52, %v549_v46 }
 0x4b4   :  { %v554_v53 = vsel %vm217_vm7, %v552_v49, %v547_v50  ;;  %v970_v49 = vld [vmem:[%s1881_s9] ss:$0 sm:$0xff] }
 0x4b5   :  { %1116 = vmatprep.mubr.msk.f32.mxu0 %vm226_vm9, %v554_v53 }
 0x4b6   :  { %1117 = vmatmul.mubr.msk.f32.vlgmr.msra.gmra.mrb[4].mxu0 %vm226_vm9, %v555_v55 }
 0x4b7   :  { %1315 = vmatpush3.bf16.msra.mxu0 %v1659_v45 }
 0x4b8   :  { %1317 = vmatprep.subr.bf16.mxu0 %v1664_v47 }
 0x4bb   :  { %1319 = vmatpush3.bf16.msra.mxu0 %v1664_v47 }
 0x4bc   :  { %1321 = vmatprep.subr.bf16.mxu0 %v1676_v51 }
 0x4bf   :  { %1323 = vmatpush3.bf16.msra.mxu0 %v1676_v51 }
 0x4c0   :  { %1325 = vmatprep.subr.bf16.mxu0 %v1686_v54 }
 0x4c3   :  { %1327 = vmatpush3.bf16.msra.mxu0 %v1686_v54 }
 0x4c4   :  { %1329 = vmatprep.subr.bf16.mxu0 %v1696_v57 }
 0x4c7   :  { %1331 = vmatpush3.bf16.msra.mxu0 %v1696_v57 }
 0x4c8   :  { %1333 = vmatprep.subr.bf16.mxu0 %v1707_v60 }
 0x4cb   :  { %1335 = vmatpush3.bf16.msra.mxu0 %v1707_v60 }
 0x4cc   :  { %1336 = vmatprep.subr.bf16.mxu0 %v1385_v3 }
 0x589   :  { %v1118_v45 = vpop.f32.mrb[4].mxu0 }
 0x58a   :  { %v634_v47 = vadd.f32 %v1118_v45, %v1713_v61  ;;  %v628_v56 = vpop.f32.mrb[5].mxu0 }
 0x58b   :  { %v629_v51 = vadd.f32 %v1713_v61, %v628_v56 }
 0x58c   :  { %v638_v58 = vmax.f32 %v634_v47, 0.0 }
 0x58d   :  { %v637_v59 = vmax.f32 %v629_v51, 0.0 }
 0x58e   :  { %v642_v62 = vrot.slane %v638_v58, 1  ;;  %v651_v1 = vrot.slane %v638_v58, 2 }
 0x58f   :  { %v641_v54 = vrot.slane %v637_v59, 1  ;;  %v650_v63 = vrot.slane %v637_v59, 2 }
 0x590   :  { %646 = vrot.lane.b32.xlu0 %v642_v62, %s1388_s26 }
 0x591   :  { %v643_v57 = vsel %vm194_vm6, %v641_v54, %v642_v62  ;;  %v652_v60 = vsel %vm204_vm5, %v650_v63, %v651_v1 }
 0x592   :  { %644 = vrot.lane.b32.xlu1 %v643_v57, %s1388_s26 }
 0x594   :  { %655 = vrot.lane.b32.xlu0 %v651_v1, %s1389_s2 }
 0x596   :  { %653 = vrot.lane.b32.xlu1 %v652_v60, %s1389_s2 }
 0x602   :  { %v647_v2 = vpop.permute.xlu0 %646 }
 0x603   :  { %v660_v10 = vsel %vm214_vm8, %v638_v58, %v647_v2 }
 0x604   :  { %v645_v61 = vpop.permute.xlu1 %644 }
 0x605   :  { %v659_v5 = vsel %vm214_vm8, %v637_v59, %v645_v61 }
 0x606   :  { %v656_v4 = vpop.permute.xlu0 %655 }
 0x607   :  { %v662_v13 = vsel %vm217_vm7, %v660_v10, %v656_v4 }
 0x608   :  { %v654_v6 = vpop.permute.xlu1 %653 }
 0x609   :  { %v661_v11 = vsel %vm217_vm7, %v659_v5, %v654_v6 }
 0x60a   :  { %1143 = vmatprep.mubr.msk.f32.mxu0 %vm226_vm9, %v661_v11 }
 0x60b   :  { %1144 = vmatmul.mubr.msk.f32.vlgmr.msra.gmra.mrb[6].mxu0 %vm226_vm9, %v662_v13 }
 0x60c   :  { %1338 = vmatpush3.bf16.msra.mxu0 %v1337_v17  ;;  %1154 = vmatprep.mubr.msk.f32.mxu0 %vm1391_vm15, %v1386_v40 }
 0x60d   :  { %1339 = vmatprep.subr.bf16.mxu0 %v1385_v3  ;;  %v430_v3 = vmax.f32 %v428_v9, %v429_v27 }
 0x60f   :  { %v431_v43 = vrot.slane %v430_v3, 1 }
 0x610   :  { %1341 = vmatpush3.bf16.msra.mxu0 %v1340_v22 }
 0x611   :  { %v432_v29 = vmax.f32 %v430_v3, %v431_v43 }
 0x6de   :  { %v1145_v0 = vpop.f32.mrb[6].mxu0 }
 0x6df   :  { %v741_v8 = vadd.f32 %v1145_v0, %v1772_v12  ;;  %v735_v7 = vpop.f32.mrb[7].mxu0 }
 0x6e0   :  { %v736_v40 = vadd.f32 %v1772_v12, %v735_v7 }
 0x6e1   :  { %v745_v15 = vmax.f32 %v741_v8, 0.0 }
 0x6e2   :  { %v744_v18 = vmax.f32 %v736_v40, 0.0 }
 0x6e3   :  { %v747_v21 = vsel %vm424_vm14, %v745_v15, -inf }
 0x6e4   :  { %v746_v24 = vsel %vm214_vm8, %v744_v18, -inf }
 0x6e5   :  { %v748_v30 = vmax.f32 %v746_v24, %v747_v21 }
 0x6e7   :  { %v749_v33 = vrot.slane %v748_v30, 4 }
 0x6e9   :  { %v750_v36 = vmax.f32 %v748_v30, %v749_v33 }
 0x6eb   :  { %v751_v41 = vrot.slane %v750_v36, 2 }
 0x6ed   :  { %v752_v44 = vmax.f32 %v750_v36, %v751_v41 }
 0x6ef   :  { %v753_v48 = vrot.slane %v752_v44, 1 }
 0x6f1   :  { %v754_v12 = vmax.f32 %v752_v44, %v753_v48 }
 0x6f3   :  { %v756_v31 = vsel %vm755_vm0, %v432_v29, %v754_v12 }
 0x6f4   :  { %1155 = vmatmul.mubr.msk.f32.vlgmr.msra.gmra.mrb[8].mxu0 %vm214_vm8, %v756_v31 }
 0x7c7   :  { %v837_v37 = vpop.f32.mrb[8].mxu0 }
 0x7c8   :  { %v838_v38 = vadd.f32 %v968_v35, %v837_v37  ;;  %v1156_v42 = vpop.f32.mrb[9].mxu0 }
 0x7ca   :  { %v841_v46 = vmax.f32 %v838_v38, 0.0 }
 0x7cc   :  { %1166 = vmatmul.mubr.msk.f32.vlgmr.msra.gmra.mrb[8].mxu1 %vm214_vm8, %v841_v46 }
 0x89f   :  { %v922_v50 = vpop.f32.mrb[8].mxu1 }
 0x8a0   :  { %v923_v52 = vadd.f32 %v970_v49, %v922_v50  ;;  %v1167_v53 = vpop.f32.mrb[9].mxu1 }
 0x8a2   :  { %927 = vst.msk [vmem:[#allocation2] sm:$0x3] %vm926_vm1, %v923_v52 }
 0x8a3   :  { %1371 = shalt.err (!%p1368_p4)
}
 0x8a4   :  { %s1372_s29 = scalar_lea.hbm %s1882_s10, 32 }
 0x8a5   :  { %p1373_p5 = scmp.ne.s32.totalorder %s1882_s10, %s1372_s29  ;;  %p1376_p6 = scmp.lt.u32.totalorder %s1372_s29, %s1882_s10 }
 0x8a7   :  { %p1378_p7 = pnand %p1376_p6, %p1373_p5 }
 0x8a9   :  { %1381 = shalt.err (!%p1378_p7)
}
 0x8aa   :  { %937 = dma.vmem_to_hbm [thread:$0]  %s935_s28, 32, %s1882_s10, [#allocation3]  }
 0x8ab   :  { %1382 = dma.done.wait [#allocation3], 32  }
 0x8ac   :  { %1383 = vsyncadd [#allocation3], 4294967264 }
 0x8ad   :  { %941 = vsyncpa [#allocation3], 1 }

</bundles_post_ra>
